<compile_context>
chip_gen: v7x
topology: tpu7x:2x2x1
jax: 0.10.0
libtpu: 0.0.40
codegen_flags: <defaults>
</compile_context>

<pallas_src>
import functools

import jax
import jax.numpy as jnp
from jax import lax
from jax.experimental import pallas as pl
from jax.experimental.pallas import tpu as pltpu

_EPS = 1e-5
_VMEM_LIMIT = 48 * 1024 * 1024  # above 16/32 MiB scoped defaults, below v7x 64 MiB physical


def _pick_block_batch(B, L, C):
    """Largest divisor of B whose per-step block fits a ~12 MiB VMEM budget, keeping
    >=2 grid steps (so both v7x TensorCores get work) and stopping once matmul M is
    ample."""
    lanes = max(C, 128)                    # lane dim pads to 128 in VMEM
    per_elem = 20 * (L + 4) * lanes        # rough bytes/batch element across all buffers
    budget = 12 << 20
    best = 1
    for bt in range(1, B + 1):
        if B % bt:
            continue
        if B >= 2 and B // bt < 2:
            break                          # would leave a v7x TensorCore idle
        if bt * per_elem > budget:
            break                          # re-derived for v7x's 64 MiB physical VMEM
        best = bt
        if bt * (L + 2) >= 512:
            break                          # matmul M already large enough
    return best


def _conv_stats_kernel(x_ref, w_ref, y_ref, stats_ref, xp_ref, *, L, L_conv, Bt):
    """Conv1d(k=3, circular pad=2, no bias) for Bt batch elements + channel sum/sumsq."""
    C = x_ref.shape[2]
    # Circularly padded slab (L+4, C) per element, built in VMEM with offset ref stores
    # (one store pass over x; no value-level concatenate, no extra HBM copy of x).
    xp_ref[:, pl.ds(2, L), :] = x_ref[...]
    xp_ref[:, pl.ds(0, 2), :] = x_ref[:, pl.ds(L - 2, 2), :]
    xp_ref[:, pl.ds(L + 2, 2), :] = x_ref[:, pl.ds(0, 2), :]

    s1 = jnp.zeros((1, C), jnp.float32)
    s2 = jnp.zeros((1, C), jnp.float32)
    for b in range(Bt):  # static unroll over the batch block
        # Three accumulated bf16 MXU dots; taps are read directly from the padded slab
        # (ref slices at row offsets 0/1/2), accumulation in f32.
        acc = jnp.dot(xp_ref[b, pl.ds(0, L_conv), :].astype(jnp.bfloat16), w_ref[0],
                      preferred_element_type=jnp.float32)
        acc += jnp.dot(xp_ref[b, pl.ds(1, L_conv), :].astype(jnp.bfloat16), w_ref[1],
                       preferred_element_type=jnp.float32)
        acc += jnp.dot(xp_ref[b, pl.ds(2, L_conv), :].astype(jnp.bfloat16), w_ref[2],
                       preferred_element_type=jnp.float32)
        y_ref[b] = acc.astype(jnp.bfloat16)          # bf16 HBM intermediate
        # One-pass BatchNorm statistics kept in f32; acc is bias-free (near-zero mean),
        # so the E[y^2]-E[y]^2 formulation stays well conditioned.
        s1 += jnp.sum(acc, axis=0, keepdims=True)
        s2 += jnp.sum(acc * acc, axis=0, keepdims=True)
    stats_ref[pl.ds(0, 1), :] = s1
    stats_ref[pl.ds(1, 1), :] = s2


def _bn_elu_pool_kernel(y_ref, scale_ref, shift_ref, o_ref, zp_ref, *, L_conv, L_out, Bt):
    """Folded BatchNorm (per-channel scale/shift) -> ELU -> MaxPool1d(3, stride=2, pad=1)."""
    C = y_ref.shape[2]
    # -inf pad written only where needed: row 0 plus the (<=1) tail row past L_conv;
    # every other row is overwritten by z below (saves a full store pass per step).
    neg = jnp.full((1, C), -jnp.inf, jnp.float32)
    zp_ref[pl.ds(0, 1), :] = neg
    tail = zp_ref.shape[0] - 1 - L_conv
    if tail > 0:
        zp_ref[pl.ds(1 + L_conv, tail), :] = jnp.broadcast_to(neg, (tail, C))

    scale = scale_ref[...]                            # (1, C)
    shift = shift_ref[...]                            # (1, C)
    # TODO(synk): on v6e/v7x the BN/ELU/pool math could run in bf16 for extra VPU/EUP
    # throughput; kept f32 so v5e (no bf16 VPU/EUP) is not pessimized.
    for b in range(Bt):  # static unroll over the batch block
        z = y_ref[b].astype(jnp.float32) * scale + shift                 # BN: one mul+add
        z = jnp.where(z > 0, z, jnp.exp(jnp.minimum(z, 0.0)) - 1.0)      # ELU(alpha=1)
        zp_ref[pl.ds(1, L_conv), :] = z
        # out[l] = max(zp[2l], zp[2l+1], zp[2l+2]) over the -inf padded copy.
        a = zp_ref[pl.ds(0, L_out, stride=2), :]
        m = zp_ref[pl.ds(1, L_out, stride=2), :]
        c = zp_ref[pl.ds(2, L_out, stride=2), :]
        o_ref[b] = jnp.maximum(jnp.maximum(a, m), c).astype(o_ref.dtype)


def conv_layer_forward(x, w_oik, bias, gamma, beta):
    """x: (B, L, C) float32 -> (B, L_out, C), matching the PyTorch ConvLayer forward.

    `bias` is accepted for interface parity but provably cancels under train-mode
    BatchNorm (a per-channel constant shift is absorbed by the batch mean)."""
    del bias
    B, L, C = x.shape
    L_conv = L + 2                      # circular pad 2 each side, valid conv with k=3
    L_out = (L_conv - 1) // 2 + 1       # MaxPool1d(3, stride=2, padding=1)
    Bt = _pick_block_batch(B, L, C)
    steps = B // Bt
    # (C_out, C_in, 3) -> (3, C_in, C_out), bf16 so each tap dot is a single MXU pass.
    w_taps = jnp.transpose(w_oik, (2, 1, 0)).astype(jnp.bfloat16)

    params = pltpu.CompilerParams(dimension_semantics=("parallel",),
                                  vmem_limit_bytes=_VMEM_LIMIT)

    # ---- pass 1: conv (bias-free) + per-step per-channel sum / sum-of-squares --------
    conv_kernel = functools.partial(_conv_stats_kernel, L=L, L_conv=L_conv, Bt=Bt)
    y, stats = pl.pallas_call(
        conv_kernel,
        grid=(steps,),
        out_shape=(jax.ShapeDtypeStruct((B, L_conv, C), jnp.bfloat16),
                   jax.ShapeDtypeStruct((steps, 2, C), jnp.float32)),
        in_specs=[pl.BlockSpec((Bt, L, C), lambda b: (b, 0, 0)),
                  pl.BlockSpec((3, C, C), lambda b: (0, 0, 0))],
        out_specs=(pl.BlockSpec((Bt, L_conv, C), lambda b: (b, 0, 0)),
                   pl.BlockSpec((None, 2, C), lambda b: (b, 0, 0))),
        scratch_shapes=[pltpu.VMEM((Bt, L + 4, C), jnp.float32)],
        compiler_params=params,
    )(x, w_taps)

    # ---- global BatchNorm stats (train mode, biased var), folded into scale/shift ----
    n = jnp.float32(B * L_conv)
    tot = jnp.sum(stats, axis=0)                                       # (2, C)
    mean = tot[0] / n
    var = jnp.maximum(tot[1] / n - mean * mean, 0.0)
    scale = gamma * lax.rsqrt(var + _EPS)
    shift = beta - mean * scale
    # TODO(synk): BatchNorm running_mean/running_var buffer updates (training-state side
    # effect) are not materialized; batch statistics are used as in the train-mode forward.

    # ---- pass 2: normalize + ELU + max-pool -------------------------------------------
    pool_kernel = functools.partial(_bn_elu_pool_kernel, L_conv=L_conv, L_out=L_out, Bt=Bt)
    out = pl.pallas_call(
        pool_kernel,
        grid=(steps,),
        out_shape=jax.ShapeDtypeStruct((B, L_out, C), x.dtype),
        in_specs=[pl.BlockSpec((Bt, L_conv, C), lambda b: (b, 0, 0)),
                  pl.BlockSpec((1, C), lambda b: (0, 0)),
                  pl.BlockSpec((1, C), lambda b: (0, 0))],
        out_specs=pl.BlockSpec((Bt, L_out, C), lambda b: (b, 0, 0)),
        scratch_shapes=[pltpu.VMEM((2 * L_out + 1, C), jnp.float32)],
        compiler_params=params,
    )(y, scale.reshape(1, C), shift.reshape(1, C))
    return out


def _reference_forward(x, w_oik, bias, gamma, beta):
    """Pure-JAX reference of the PyTorch ConvLayer forward (train-mode BatchNorm)."""
    xc = jnp.transpose(x, (0, 2, 1))                                    # (B, C, L)
    xp = jnp.concatenate([xc[:, :, -2:], xc, xc[:, :, :2]], axis=-1)    # circular pad 2
    y = lax.conv_general_dilated(xp, w_oik, window_strides=(1,), padding='VALID',
                                 dimension_numbers=('NCH', 'OIH', 'NCH'),
                                 precision=lax.Precision.HIGHEST)
    y = y + bias[None, :, None]
    mean = jnp.mean(y, axis=(0, 2), keepdims=True)
    var = jnp.mean(jnp.square(y - mean), axis=(0, 2), keepdims=True)
    y = (y - mean) / jnp.sqrt(var + _EPS)
    y = y * gamma[None, :, None] + beta[None, :, None]
    y = jnp.where(y > 0, y, jnp.exp(jnp.minimum(y, 0.0)) - 1.0)         # ELU
    yp = jnp.pad(y, ((0, 0), (0, 0), (1, 1)), constant_values=-jnp.inf)
    y = lax.reduce_window(yp, -jnp.inf, lax.max,
                          window_dimensions=(1, 1, 3), window_strides=(1, 1, 2),
                          padding='VALID')
    return jnp.transpose(y, (0, 2, 1))


if __name__ == "__main__":
    B, L, C = 2, 16, 8
    key = jax.random.PRNGKey(0)
    kx, kw, kb = jax.random.split(key, 3)
    x = jax.random.normal(kx, (B, L, C), jnp.float32)

    # Deterministic parameters (PyTorch Conv1d init bounds; BatchNorm gamma=1, beta=0).
    bound = 1.0 / (C * 3) ** 0.5
    w_oik = jax.random.uniform(kw, (C, C, 3), jnp.float32, -bound, bound)  # (out, in, k)
    bias = jax.random.uniform(kb, (C,), jnp.float32, -bound, bound)
    gamma = jnp.ones((C,), jnp.float32)
    beta = jnp.zeros((C,), jnp.float32)

    out = conv_layer_forward(x, w_oik, bias, gamma, beta)
    out = jax.block_until_ready(out)
    assert out.shape == (B, (L + 2 - 1) // 2 + 1, C), out.shape

    # Reference runs in f32 HIGHEST; the kernel uses bf16 MXU operands and a bf16 HBM
    # intermediate (f32 accumulation/statistics), so tolerances are loosened accordingly.
    ref = _reference_forward(x, w_oik, bias, gamma, beta)
    if not jnp.allclose(out, ref, atol=3e-2, rtol=3e-2):
        raise AssertionError(f"mismatch, max abs err = {jnp.max(jnp.abs(out - ref))}")
    print("KERNEL_OK")
</pallas_src>

<mosaic_0001>
module attributes {stable_mosaic.version = 11 : i64} {
  func.func @_conv_stats_kernel(%arg0: i32, %arg1: memref<1x16x8xf32, #tpu.memory_space<vmem>>, %arg2: memref<3x8x8xbf16, #tpu.memory_space<vmem>>, %arg3: memref<1x18x8xbf16, #tpu.memory_space<vmem>>, %arg4: memref<1x2x8xf32, #tpu.memory_space<vmem>>, %arg5: memref<1x20x8xf32, #tpu.memory_space<vmem>>) attributes {dimension_semantics = [#tpu.dimension_semantics<parallel>], iteration_bounds = array<i64: 2>, scalar_prefetch = 0 : i64, scratch_operands = 1 : i64, tpu.core_type = #tpu.core_type<tc>, window_params = [{transform_indices = @transform_0, window_bounds = array<i64: 1, 16, 8>}, {pipeline_mode = #tpu.pipeline_mode<synchronous>, transform_indices = @transform_1, window_bounds = array<i64: 3, 8, 8>}, {transform_indices = @transform_2, window_bounds = array<i64: 1, 18, 8>}, {transform_indices = @transform_3, window_bounds = array<i64: 1, 2, 8>}]} {
    %c0 = arith.constant 0 : index
    %c0_0 = arith.constant 0 : index
    %c0_1 = arith.constant 0 : index
    %0 = vector.load %arg1[%c0, %c0_0, %c0_1] : memref<1x16x8xf32, #tpu.memory_space<vmem>>, vector<1x16x8xf32>
    %c0_2 = arith.constant 0 : index
    %c2 = arith.constant 2 : index
    %c0_3 = arith.constant 0 : index
    %1 = vector.load %arg5[%c0_2, %c2, %c0_3] : memref<1x20x8xf32, #tpu.memory_space<vmem>>, vector<1x16x8xf32>
    tpu.vector_store %arg5[%c0_2, %c2, %c0_3], %0 {strides = array<i32>} : memref<1x20x8xf32, #tpu.memory_space<vmem>>, vector<1x16x8xf32>,
    %c0_4 = arith.constant 0 : index
    %c14 = arith.constant 14 : index
    %c0_5 = arith.constant 0 : index
    %2 = vector.load %arg1[%c0_4, %c14, %c0_5] : memref<1x16x8xf32, #tpu.memory_space<vmem>>, vector<1x2x8xf32>
    %c0_6 = arith.constant 0 : index
    %c0_7 = arith.constant 0 : index
    %c0_8 = arith.constant 0 : index
    %3 = vector.load %arg5[%c0_6, %c0_7, %c0_8] : memref<1x20x8xf32, #tpu.memory_space<vmem>>, vector<1x2x8xf32>
    tpu.vector_store %arg5[%c0_6, %c0_7, %c0_8], %2 {strides = array<i32>} : memref<1x20x8xf32, #tpu.memory_space<vmem>>, vector<1x2x8xf32>,
    %c0_9 = arith.constant 0 : index
    %c0_10 = arith.constant 0 : index
    %c0_11 = arith.constant 0 : index
    %4 = vector.load %arg1[%c0_9, %c0_10, %c0_11] : memref<1x16x8xf32, #tpu.memory_space<vmem>>, vector<1x2x8xf32>
    %c0_12 = arith.constant 0 : index
    %c18 = arith.constant 18 : index
    %c0_13 = arith.constant 0 : index
    %5 = vector.load %arg5[%c0_12, %c18, %c0_13] : memref<1x20x8xf32, #tpu.memory_space<vmem>>, vector<1x2x8xf32>
    tpu.vector_store %arg5[%c0_12, %c18, %c0_13], %4 {strides = array<i32>} : memref<1x20x8xf32, #tpu.memory_space<vmem>>, vector<1x2x8xf32>,
    %cst = arith.constant 0.000000e+00 : f32
    %6 = vector.broadcast %cst : f32 to vector<1x8xf32>
    %cst_14 = arith.constant 0.000000e+00 : f32
    %7 = vector.broadcast %cst_14 : f32 to vector<1x8xf32>
    %c0_15 = arith.constant 0 : index
    %c0_16 = arith.constant 0 : index
    %c0_17 = arith.constant 0 : index
    %8 = vector.load %arg5[%c0_15, %c0_16, %c0_17] : memref<1x20x8xf32, #tpu.memory_space<vmem>>, vector<1x18x8xf32>
    %9 = vector.shape_cast %8 : vector<1x18x8xf32> to vector<18x8xf32>
    %10 = arith.truncf %9 : vector<18x8xf32> to vector<18x8xbf16>
    %c0_18 = arith.constant 0 : index
    %c0_19 = arith.constant 0 : index
    %c0_20 = arith.constant 0 : index
    %11 = vector.load %arg2[%c0_18, %c0_19, %c0_20] : memref<3x8x8xbf16, #tpu.memory_space<vmem>>, vector<1x8x8xbf16>
    %12 = vector.shape_cast %11 : vector<1x8x8xbf16> to vector<8x8xbf16>
    %cst_21 = arith.constant dense<0.000000e+00> : vector<18x8xf32>
    %13 = tpu.matmul %10, %12, %cst_21 {dimension_numbers = #tpu.dot_dimension_numbers<[1], [0], [0], [1], [0, 0, 1, 1], [], []>} : vector<18x8xbf16>, vector<8x8xbf16>, vector<18x8xf32> -> vector<18x8xf32>
    %c0_22 = arith.constant 0 : index
    %c1 = arith.constant 1 : index
    %c0_23 = arith.constant 0 : index
    %14 = vector.load %arg5[%c0_22, %c1, %c0_23] : memref<1x20x8xf32, #tpu.memory_space<vmem>>, vector<1x18x8xf32>
    %15 = vector.shape_cast %14 : vector<1x18x8xf32> to vector<18x8xf32>
    %16 = arith.truncf %15 : vector<18x8xf32> to vector<18x8xbf16>
    %c1_24 = arith.constant 1 : index
    %c0_25 = arith.constant 0 : index
    %c0_26 = arith.constant 0 : index
    %17 = vector.load %arg2[%c1_24, %c0_25, %c0_26] : memref<3x8x8xbf16, #tpu.memory_space<vmem>>, vector<1x8x8xbf16>
    %18 = vector.shape_cast %17 : vector<1x8x8xbf16> to vector<8x8xbf16>
    %cst_27 = arith.constant dense<0.000000e+00> : vector<18x8xf32>
    %19 = tpu.matmul %16, %18, %cst_27 {dimension_numbers = #tpu.dot_dimension_numbers<[1], [0], [0], [1], [0, 0, 1, 1], [], []>} : vector<18x8xbf16>, vector<8x8xbf16>, vector<18x8xf32> -> vector<18x8xf32>
    %20 = arith.addf %13, %19 : vector<18x8xf32>
    %c0_28 = arith.constant 0 : index
    %c2_29 = arith.constant 2 : index
    %c0_30 = arith.constant 0 : index
    %21 = vector.load %arg5[%c0_28, %c2_29, %c0_30] : memref<1x20x8xf32, #tpu.memory_space<vmem>>, vector<1x18x8xf32>
    %22 = vector.shape_cast %21 : vector<1x18x8xf32> to vector<18x8xf32>
    %23 = arith.truncf %22 : vector<18x8xf32> to vector<18x8xbf16>
    %c2_31 = arith.constant 2 : index
    %c0_32 = arith.constant 0 : index
    %c0_33 = arith.constant 0 : index
    %24 = vector.load %arg2[%c2_31, %c0_32, %c0_33] : memref<3x8x8xbf16, #tpu.memory_space<vmem>>, vector<1x8x8xbf16>
    %25 = vector.shape_cast %24 : vector<1x8x8xbf16> to vector<8x8xbf16>
    %cst_34 = arith.constant dense<0.000000e+00> : vector<18x8xf32>
    %26 = tpu.matmul %23, %25, %cst_34 {dimension_numbers = #tpu.dot_dimension_numbers<[1], [0], [0], [1], [0, 0, 1, 1], [], []>} : vector<18x8xbf16>, vector<8x8xbf16>, vector<18x8xf32> -> vector<18x8xf32>
    %27 = arith.addf %20, %26 : vector<18x8xf32>
    %28 = arith.truncf %27 : vector<18x8xf32> to vector<18x8xbf16>
    %c0_35 = arith.constant 0 : index
    %c0_36 = arith.constant 0 : index
    %c0_37 = arith.constant 0 : index
    %29 = vector.load %arg3[%c0_35, %c0_36, %c0_37] : memref<1x18x8xbf16, #tpu.memory_space<vmem>>, vector<1x18x8xbf16>
    %30 = vector.shape_cast %29 : vector<1x18x8xbf16> to vector<18x8xbf16>
    %31 = vector.shape_cast %28 : vector<18x8xbf16> to vector<1x18x8xbf16>
    tpu.vector_store %arg3[%c0_35, %c0_36, %c0_37], %31 {strides = array<i32>} : memref<1x18x8xbf16, #tpu.memory_space<vmem>>, vector<1x18x8xbf16>,
    %cst_38 = arith.constant dense<0.000000e+00> : vector<8xf32>
    %32 = vector.multi_reduction <add>, %27, %cst_38 [0] : vector<18x8xf32> to vector<8xf32>
    %33 = vector.shape_cast %32 : vector<8xf32> to vector<1x8xf32>
    %34 = arith.addf %6, %33 : vector<1x8xf32>
    %35 = arith.mulf %27, %27 : vector<18x8xf32>
    %cst_39 = arith.constant dense<0.000000e+00> : vector<8xf32>
    %36 = vector.multi_reduction <add>, %35, %cst_39 [0] : vector<18x8xf32> to vector<8xf32>
    %37 = vector.shape_cast %36 : vector<8xf32> to vector<1x8xf32>
    %38 = arith.addf %7, %37 : vector<1x8xf32>
    %c0_40 = arith.constant 0 : index
    %c0_41 = arith.constant 0 : index
    %c0_42 = arith.constant 0 : index
    %39 = vector.load %arg4[%c0_40, %c0_41, %c0_42] : memref<1x2x8xf32, #tpu.memory_space<vmem>>, vector<1x1x8xf32>
    %40 = vector.shape_cast %39 : vector<1x1x8xf32> to vector<1x8xf32>
    %41 = vector.shape_cast %34 : vector<1x8xf32> to vector<1x1x8xf32>
    tpu.vector_store %arg4[%c0_40, %c0_41, %c0_42], %41 {strides = array<i32>} : memref<1x2x8xf32, #tpu.memory_space<vmem>>, vector<1x1x8xf32>,
    %c0_43 = arith.constant 0 : index
    %c1_44 = arith.constant 1 : index
    %c0_45 = arith.constant 0 : index
    %42 = vector.load %arg4[%c0_43, %c1_44, %c0_45] : memref<1x2x8xf32, #tpu.memory_space<vmem>>, vector<1x1x8xf32>
    %43 = vector.shape_cast %42 : vector<1x1x8xf32> to vector<1x8xf32>
    %44 = vector.shape_cast %38 : vector<1x8xf32> to vector<1x1x8xf32>
    tpu.vector_store %arg4[%c0_43, %c1_44, %c0_45], %44 {strides = array<i32>} : memref<1x2x8xf32, #tpu.memory_space<vmem>>, vector<1x1x8xf32>,
    return
  }
  func.func @transform_0(%arg0: i32) -> (i32, i32, i32) {
    %c0_i32 = arith.constant 0 : i32
    %c0_i32_0 = arith.constant 0 : i32
    %c0_i32_1 = arith.constant 0 : i32
    return %arg0, %c0_i32, %c0_i32_0 : i32, i32, i32
  }
  func.func @transform_1(%arg0: i32) -> (i32, i32, i32) {
    %c0_i32 = arith.constant 0 : i32
    %c0_i32_0 = arith.constant 0 : i32
    %c0_i32_1 = arith.constant 0 : i32
    %c0_i32_2 = arith.constant 0 : i32
    return %c0_i32, %c0_i32_0, %c0_i32_1 : i32, i32, i32
  }
  func.func @transform_2(%arg0: i32) -> (i32, i32, i32) {
    %c0_i32 = arith.constant 0 : i32
    %c0_i32_0 = arith.constant 0 : i32
    %c0_i32_1 = arith.constant 0 : i32
    return %arg0, %c0_i32, %c0_i32_0 : i32, i32, i32
  }
  func.func @transform_3(%arg0: i32) -> (i32, i32, i32) {
    %c0_i32 = arith.constant 0 : i32
    %c0_i32_0 = arith.constant 0 : i32
    %c0_i32_1 = arith.constant 0 : i32
    return %arg0, %c0_i32, %c0_i32_0 : i32, i32, i32
  }
}

</mosaic_0001>

<bundles_post_ra>
// kernel: tpu_custom_call.1
= control target key start
LH: loop header
LB: loop body
LE: loop exit
PB: predicated region body
PF: predicated region fallthrough
CT: control target
= control target key end

     0   :  { %9 = vsyncpa [#allocation4], 0  ;;  %s871_s0 = inlined_call_operand.vmem [shape: f32[2,16,8], index: 0, kind: input, shape index: {}]   ;;  %s872_s1 = inlined_call_operand.vmem [shape: bf16[3,8,8], index: 1, kind: input, shape index: {}]   ;;  %s873_s2 = inlined_call_operand.vmem [shape: bf16[2,18,8], index: 2, kind: output, shape index: {0}]   ;;  %s874_s3 = inlined_call_operand.hbm [shape: f32[2,2,8], index: 3, kind: output, shape index: {1}]  }
   0x1   :  { %11 = vsyncpa [#allocation4 + $0x1], 0  ;;  %s730_s12 = smov 0   ;;  %s732_s13 = smov 0  }
   0x2   :  { %s734_s14 = smov 0   ;;  %s736_s15 = smov 0  }
   0x3 LB: > { %s751_s16 = sadd.s32 4294967295, %s707_s15   ;;  %s541_s17 = sadd.s32 4294967294, %s707_s15   ;;  %s707_s15 = sphi %s736_s15, %s880_s15   ;;  %s703_s14 = sphi %s734_s14, %s879_s14   ;;  %s699_s13 = sphi %s732_s13, %s878_s13   ;;  %s695_s12 = sphi %s730_s12, %s877_s12  }
   0x4   : > { %s755_s18 = sadd.s32 1, %s707_s15   ;;  %s97_s19 = sadd.s32 1, %s703_s14 }
   0x5   : > { %s94_s20 = ssub.s32 %s707_s15, %s755_s18  ;;  %p107_p0 = scmp.ne.s32.totalorder %s703_s14, %s699_s13 }
   0x6   : > { %p95_p1 = scmp.eq.s32.totalorder %s94_s20, 0  ;;  %p108_p2 = scmp.eq.s32.totalorder %s751_s16, 1 }
   0x7   : > { %p113_p3 = scmp.ne.s32.totalorder %s699_s13, %s695_s12  ;;  %p114_p4 = scmp.eq.s32.totalorder %s541_s17, 1 }
   0x8   : > { %s766_s21 = scalar_select %p95_p1, %s703_s14, %s97_s19  }
   0x9   : > { %p768_p5 = por %p108_p2, %p107_p0  ;;  %p772_p6 = por %p114_p4, %p113_p3 }
   0xa   : > { %p544_p7 = scmp.ge.s32.totalorder %s707_s15, 1  ;;  %p143_p8 = scmp.lt.s32.totalorder %s707_s15, 3 }
   0xc   : > { %p144_p9 = pnand %p544_p7, %p143_p8 }
   0xd   : > { %v198_v0 = vld [vmem:[%s872_s1] sm:$0xf] (!%p144_p9)  ;;  %vm212_vm0 = vcmask (!%p144_p9), 1043456   ;;  %p172_p10 = scmp.lt.s32.totalorder (!%p144_p9), %s751_s16, 1  ;;  %v554_v2 = vld [vmem:[%s872_s1 + $0x8] sm:$0xf] (!%p144_p9) }
   0xe   : > { %147 = sbr.rel (%p144_p9) target bundleno = 300 (0x12c), region = 28  ;;  %603 = vmatprep.subr.msk.bf16.mxu0 (!%p144_p9), %vm212_vm0, %v198_v0  ;;  %v271_v1 = vsel (!%p144_p9), %vm212_vm0, %v198_v0, 0  ;;  %v549_v3 = vld [vmem:[%s872_s1 + $0x4] sm:$0xf] (!%p144_p9)  ;;  %vm185_vm1 = vcmask (!%p144_p9), 64512   ;;  %vm189_vm2 = vcmask (!%p144_p9), 58368  }
   0xf   : > { %584 = vmatpush3.bf16.msra.mxu0 (!%p144_p9), %v271_v1  ;;  %602 = vmatprep.subr.msk.bf16.mxu1 (!%p144_p9), %vm212_vm0, %v549_v3  ;;  %v214_v4 = vsel (!%p144_p9), %vm212_vm0, %v549_v3, 0  ;;  %v335_v17 = vsel (!%p144_p9), %vm212_vm0, %v554_v2, 0  ;;  %vm404_vm3 = vcmask (!%p144_p9), 57344   ;;  %vm401_vm4 = vcmask (!%p144_p9), 60416   ;;  %s169_s17 = sand.u32 (!%p144_p9), 1, %s699_s13   ;;  %s561_s20 = sshll.u32 (!%p144_p9), %s751_s16, 5 }
  0x10   : > { %604 = vmatprep.subr.msk.bf16.mxu0 (!%p144_p9), %vm212_vm0, %v554_v2  ;;  %578 = vmatpush3.bf16.msra.mxu1 (!%p144_p9), %v214_v4  ;;  %s545_s19 = sshll.u32 (!%p144_p9), %s169_s17, 1  ;;  %s828_s28 = scalar_lea.hbm (!%p144_p9), %s874_s3, %s561_s20 }
  0x11   : > { %s171_s24 = scalar_lea.vmem (!%p144_p9), [#allocation3], %s545_s19 }
  0x12   : > { %s457_s25 = sshll.u32 (!%p144_p9), %s171_s24, 4  ;;  %s830_s25 = int_to_ptr.vmem [resolvable:$true] %s457_s25 }
  0x13   : > { %s645_s29 = scalar_lea.vmem (!%p144_p9), %s830_s25, 32 }
  0x14   : > { %p646_p11 = scmp.ne.s32.totalorder (!%p144_p9), %s830_s25, %s645_s29 }
  0x15   : > { %s791_s30 = scalar_select %p172_p10, %s751_s16, 1 }
  0x16   : > { %s441_s16 = scalar_lea.sflag [#allocation4], %s169_s17  ;;  %p647_p12 = pnand %p646_p11, %p768_p5 }
  0x17   : > { %s564_s4 = sshll.u32 %s791_s30, 4  ;;  %s605_s8 = smul.u32 12, %s791_s30 }
  0x18   : > { %s176_s7 = scalar_lea.vmem %s871_s0, %s564_s4  ;;  %p648_p13 = pneg %p647_p12 }
  0x19   : > { %v183_v5 = vld [vmem:[%s176_s7] sm:$0xff]  ;;  %v184_v6 = vld [vmem:[%s176_s7 + $0x8] sm:$0xff]  ;;  %s181_s11 = scalar_lea.vmem %s873_s2, %s605_s8  ;;  %s709_s30 = smov [#allocation3]  }
  0x1a   : > { %v188_v7 = vld [vmem:[%s176_s7 + $0xe] sm:$0x3]  ;;  %186 = vst.msk [vmem:[#allocation2 + $0x2] sm:$0xff] %vm185_vm1, %v183_v5  ;;  %187 = vst.msk [vmem:[#allocation2 + $0xa] sm:$0xff] %vm185_vm1, %v184_v6  ;;  %v191_v8 = vld [vmem:[%s176_s7] sm:$0x3] }
  0x1b   : > { %190 = vst.msk [vmem:[#allocation2] sm:$0x3] %vm189_vm2, %v188_v7  ;;  %192 = vst.msk [vmem:[#allocation2 + $0x12] sm:$0x3] %vm189_vm2, %v191_v8  ;;  %s649_s4 = sshll.u32 %s709_s30, 4  ;;  %s650_s4 = int_to_ptr.vmem [resolvable:$false] %s649_s4 }
  0x1c   : > { %s651_s5 = scalar_lea.vmem %s650_s4, 64  ;;  %p652_p0 = scmp.lt.s32.totalorder %s830_s25, %s650_s4 }
  0x1d   : > { %p653_p1 = scmp.lt.s32.totalorder %s651_s5, %s645_s29 }
  0x1f   : > { %p654_p2 = por %p653_p1, %p652_p0 }
  0x21   : > { %v194_v10 = vld [vmem:[#allocation2 + $0x8] sm:$0xff]  ;;  %v195_v11 = vld [vmem:[#allocation2 + $0x10] sm:$0x3]  ;;  %p655_p3 = pnand %p654_p2, %p648_p13 }
  0x22   : > { %v193_v9 = vld [vmem:[#allocation2] sm:$0xff]  ;;  %v197_v13 = vpack.c.bf16 %v195_v11, %v195_v11  ;;  %v200_v15 = vld [vmem:[#allocation2 + $0x9] sm:$0xff]  ;;  %v201_v16 = vld [vmem:[#allocation2 + $0x11] sm:$0x3] }
  0x23   : > { %v196_v12 = vpack.c.bf16 %v194_v10, %v193_v9  ;;  %v199_v14 = vld [vmem:[#allocation2 + $0x1] sm:$0xff]  ;;  %v203_v19 = vpack.c.bf16 %v201_v16, %v201_v16  ;;  %v322_v21 = vld [vmem:[#allocation2 + $0xa] sm:$0xff]  ;;  %v323_v23 = vld [vmem:[#allocation2 + $0x12] sm:$0x3] }
  0x24   : > { %v202_v18 = vpack.c.bf16 %v200_v15, %v199_v14  ;;  %v321_v20 = vld [vmem:[#allocation2 + $0x2] sm:$0xff]  ;;  %v325_v24 = vpack.c.bf16 %v323_v23, %v323_v23 }
  0x25   : > { %585 = vmatprep.mubr.msk.bf16.mxu0 %vm185_vm1, %v196_v12  ;;  %v324_v22 = vpack.c.bf16 %v322_v21, %v321_v20 }
  0x26   : > { %586 = vmatmul.mubr.msk.bf16.vlgmr.msra.gmra.mrb[0].mxu0 %vm185_vm1, %v197_v13  ;;  %579 = vmatprep.mubr.msk.bf16.mxu1 %vm185_vm1, %v202_v18 }
  0x27   : > { %590 = vmatpush3.bf16.msra.mxu0 %v335_v17  ;;  %580 = vmatmul.mubr.msk.bf16.vlgmr.msra.gmra.mrb[0].mxu1 %vm185_vm1, %v203_v19 }
  0x28   : > { %591 = vmatprep.mubr.msk.bf16.mxu0 %vm185_vm1, %v324_v22 }
  0x32   : > { %592 = vmatmul.mubr.msk.bf16.vlgmr.msra.gmra.mrb[0].mxu0 %vm185_vm1, %v325_v24 }
  0xfa   : > { %v581_v25 = vpop.f32.mrb[0].mxu1 }
  0xfb   : > { %v250_v26 = vpop.f32.mrb[1].mxu1 }
  0xfc   : > { %v582_v27 = vpop.f32.mrb[2].mxu1 }
  0xfd   : > { %v253_v28 = vpop.f32.mrb[3].mxu1 }
 0x105   : > { %v593_v29 = vpop.f32.mrb[0].mxu0 }
 0x106   : > { %v595_v30 = vadd.f32 %v593_v29, %v581_v25  ;;  %v371_v31 = vpop.f32.mrb[1].mxu0 }
 0x107   : > { %v596_v32 = vadd.f32 %v371_v31, %v250_v26  ;;  %v594_v33 = vpop.f32.mrb[2].mxu0 }
 0x108   : > { %v567_v34 = vpack.c.bf16 %v595_v30, %v595_v30  ;;  %v374_v35 = vpop.f32.mrb[3].mxu0  ;;  %v420_v39 = vmul.f32 %v595_v30, %v595_v30  ;;  %v409_v45 = vsel %vm189_vm2, %v595_v30, 0.0 }
 0x109   : > { %v565_v36 = vpack.c.bf16 %v596_v32, %v596_v32  ;;  %v418_v37 = vmul.f32 %v596_v32, %v596_v32  ;;  %v597_v38 = vadd.f32 %v374_v35, %v253_v28  ;;  %v406_v40 = vsel %vm185_vm1, %v596_v32, 0.0 }
 0x10a   : > { %405 = vst.msk [vmem:[%s181_s11 + $0x8] sm:$0x1] %vm404_vm3, %v567_v34  ;;  %v424_v50 = vsel %vm189_vm2, %v420_v39, 0.0 }
 0x10b   : > { %402 = vst.msk [vmem:[%s181_s11] sm:$0xf] %vm401_vm4, %v565_v36  ;;  %v566_v41 = vpack.c.bf16 %v597_v38, %v597_v38  ;;  %v407_v42 = vsel %vm185_vm1, %v597_v38, 0.0  ;;  %v419_v43 = vmul.f32 %v597_v38, %v597_v38  ;;  %v421_v46 = vsel %vm185_vm1, %v418_v37, 0.0 }
 0x10c   : > { %v408_v44 = vadd.f32 %v407_v42, %v406_v40 }
 0x10d   : > { %403 = vst.msk [vmem:[%s181_s11 + $0x4] sm:$0xf] %vm401_vm4, %v566_v41  ;;  %v422_v47 = vsel %vm185_vm1, %v419_v43, 0.0 }
 0x10e   : > { %v410_v48 = vadd.f32 %v409_v45, %v408_v44  ;;  %v423_v49 = vadd.f32 %v422_v47, %v421_v46 }
 0x110   : > { %v411_v51 = vrot.slane %v410_v48, 4  ;;  %v425_v52 = vadd.f32 %v424_v50, %v423_v49 }
 0x112   : > { %v412_v53 = vadd.f32 %v411_v51, %v410_v48  ;;  %v426_v54 = vrot.slane %v425_v52, 4 }
 0x114   : > { %v413_v55 = vrot.slane %v412_v53, 2  ;;  %v427_v56 = vadd.f32 %v426_v54, %v425_v52 }
 0x116   : > { %v414_v57 = vadd.f32 %v413_v55, %v412_v53  ;;  %v428_v58 = vrot.slane %v427_v56, 2 }
 0x118   : > { %v415_v59 = vrot.slane %v414_v57, 1  ;;  %v429_v60 = vadd.f32 %v428_v58, %v427_v56 }
 0x11a   : > { %v416_v61 = vadd.f32 %v415_v59, %v414_v57  ;;  %v430_v62 = vrot.slane %v429_v60, 1 }
 0x11c   : > { %v431_v63 = vadd.f32 %v430_v62, %v429_v60  ;;  %433 = vst.msk [vmem:[%s171_s24] sm:$0x1] %vm404_vm3, %v416_v61 }
 0x11e   : > { %434 = vst.msk [vmem:[%s171_s24 + $0x1] sm:$0x1] %vm404_vm3, %v431_v63 }
 0x11f   : > { %658 = shalt.err (!%p655_p3)
}
 0x120   : > { %s659_s6 = scalar_lea.hbm %s828_s28, 32  ;;  %s663_s9 = scalar_lea.hbm %s874_s3, 64 }
 0x121   : > { %p660_p4 = scmp.ne.s32.totalorder %s828_s28, %s659_s6  ;;  %p664_p9 = scmp.lt.u32.totalorder %s828_s28, %s874_s3 }
 0x122   : > { %p665_p10 = scmp.lt.u32.totalorder %s663_s9, %s659_s6  ;;  %p667_p12 = scmp.lt.u32.totalorder %s659_s6, %s828_s28 }
 0x123   : > { %p661_p7 = pnand %p660_p4, %p768_p5 }
 0x124   : > { %p666_p11 = por %p665_p10, %p664_p9 }
 0x125   : > { %p662_p8 = pneg %p661_p7 }
 0x126   : > { %p668_p13 = por %p667_p12, %p666_p11 }
 0x128   : > { %p669_p0 = pnand %p668_p13, %p662_p8 }
 0x12a   : > { %672 = shalt.err (!%p669_p0)
}
 0x12b   : > { %606 = dma.vmem_to_hbm [thread:$0]  (%p768_p5), %s830_s25, 32, %s828_s28, %s441_s16  }
 0x12c PF: > { %p612_p1 = scmp.ge.s32.totalorder %s707_s15, 2  ;;  %s477_s17 = sand.u32 1, %s695_s12  }
 0x12d   : > { %s478_s19 = scalar_lea.sflag [#allocation4], %s477_s17 }
 0x12e   : > { %p609_p2 = pnand %p612_p1, %p772_p6 }
 0x130   : > { %690 = dma.done.wait (!%p609_p2), %s478_s19, 32  }
 0x131   : > { %692 = vsyncadd (!%p609_p2), %s478_s19, 4294967264  ;;  %p14_p3 = scmp.ge.s32.totalorder %s755_s18, 4   ;;  %s877_s12 = smov %s699_s13 }
 0x132   : > { %s878_s13 = smov %s703_s14  ;;  %s879_s14 = smov %s766_s21 }
 0x133   : > { %s880_s15 = smov %s755_s18  ;;  %16 = sbr.rel (!%p14_p3) target bundleno = 3 (0x3), region = 77 }
 0x13a   :  { %483 = vsyncpa [#allocation4], 1 }
 0x13b   :  { %485 = vsyncpa [#allocation4 + $0x1], 1 }

</bundles_post_ra>
